<compile_context>
chip_gen: v6e
topology: v6e:2x2x1
jax: 0.10.0
libtpu: 0.0.40
codegen_flags: <defaults>
</compile_context>

<pallas_src>
import jax
import jax.numpy as jnp
from jax.experimental import pallas as pl
from jax.experimental.pallas import tpu as pltpu

B, L, E = 2, 8, 32          # batch, seq-len, emb_dim
VOCAB = 50
C = 64                      # conv out-channels per branch
KS = (2, 3, 4)              # conv kernel sizes
F = 3 * C                   # true concatenated feature width (192)
FP = 256                    # lane-padded feature width (full vregs / clean MXU K)
P = L * VOCAB               # folded (position, token) rows (400)
PP = 512                    # lane-padded multi-hot width
NEG_SLOPE = 0.01            # nn.LeakyReLU default


def _tree_sum(xs):
    """Binary-tree sum of a list of arrays (cuts the dependent-add chain depth)."""
    while len(xs) > 1:
        nxt = [xs[i] + xs[i + 1] for i in range(0, len(xs) - 1, 2)]
        if len(xs) % 2:
            nxt.append(xs[-1])
        xs = nxt
    return xs[0]


# ----------------------------------------------------------------------------- kernel
def textcnn_kernel(texts_ref,    # SMEM (B*L,)    int32 token ids (flattened)
                   wfull_ref,    # VMEM (PP, FP)  f32   table (x) folded conv weights
                   beff_ref,     # VMEM (1, FP)   f32   folded conv biases
                   wl_ref,       # VMEM (FP, 2)   f32   classifier weight (transposed)
                   bl_ref,       # VMEM (1, 2)    f32   classifier bias
                   o_ref):       # VMEM (B, 2)    f32
    # Multi-hot encode: multihot[b, l*VOCAB + texts[b,l]] = 1 for every position l.
    iota = jax.lax.broadcasted_iota(jnp.int32, (1, PP), 1)        # (1, PP), hoisted
    rows = []
    for b in range(B):                                            # static unroll (B=2)
        hits = [
            (iota == (texts_ref[b * L + l] + l * VOCAB)).astype(jnp.float32)
            for l in range(L)                                     # 8 independent compares
        ]
        rows.append(_tree_sum(hits))                              # 3-deep add tree
    multihot = jnp.concatenate(rows, axis=0)                      # (B, PP)

    # embedding + conv + pool + concat, all folded into one MXU matmul.
    feat = jnp.dot(multihot, wfull_ref[...], preferred_element_type=jnp.float32)
    feat = feat + beff_ref[...]                                   # bias added once

    # LeakyReLU (padded lanes stay 0).
    feat = jnp.where(feat > 0, feat, NEG_SLOPE * feat)

    # Classifier. (B,2) store is one masked vst — cheaper than a wrapper-side slice.
    out = jnp.dot(feat, wl_ref[...], preferred_element_type=jnp.float32) + bl_ref[...]
    o_ref[...] = out.astype(o_ref.dtype)


# ----------------------------------------------------------------------------- wrapper
def textcnn_forward(texts, folded):
    """texts: (B, L) int32 token ids in [0, VOCAB).  folded: prepare_params() output."""
    smem = pl.BlockSpec(memory_space=pltpu.MemorySpace.SMEM)
    vmem = pl.BlockSpec(memory_space=pltpu.MemorySpace.VMEM)
    return pl.pallas_call(
        textcnn_kernel,
        out_shape=jax.ShapeDtypeStruct((B, 2), jnp.float32),
        in_specs=[smem, vmem, vmem, vmem, vmem],
        out_specs=vmem,
    )(texts.reshape(B * L).astype(jnp.int32),
      folded["w_full"], folded["b_eff"], folded["wl"], folded["bl"])


# --------------------------------------------------------------------- offline folding
def _fold_conv_weights(params):
    """Conv(k) + AdaptiveAvgPool1d(1) folded into per-position weights.

    pooled_k[b,c] = b_k[c] + sum_p sum_e embeds[b,p,e] * A_k[p,e,c]
    with A_k[p,e,c] = (1/l_out) * sum_{j : 0<=j<=k-1, 0<=p-j<=l_out-1} w_k[j,e,c].
    """
    blocks, biases = [], []
    for k in KS:
        w = jnp.transpose(params[f"conv{k}_w"], (2, 1, 0))   # (C,E,k) -> (k,E,C)
        l_out = L - k + 1
        rows = []
        for p in range(L):
            acc = jnp.zeros((E, C), jnp.float32)
            for j in range(k):
                if 0 <= p - j <= l_out - 1:
                    acc = acc + w[j]
            rows.append(acc / l_out)
        blocks.append(jnp.stack(rows, axis=0))               # (L, E, C)
        biases.append(params[f"conv{k}_b"])
    w_eff = jnp.concatenate(blocks, axis=2)                  # (L, E, 3C)
    b_eff = jnp.concatenate(biases, axis=0).reshape(1, F)    # (1, 3C)
    return w_eff, b_eff


def prepare_params(params):
    """One-time weight folding + lane padding (run once, outside the hot path)."""
    w_eff, b_eff = _fold_conv_weights(params)
    # Fold the embedding table into the conv weights:
    # W_full[l*VOCAB + v, :] = table[v, :] @ w_eff[l]    -> (400, 192)
    w_full = jnp.einsum("ve,lec->lvc", params["embedding"], w_eff).reshape(P, F)
    # Zero-pad to full-vreg lane widths: (400,192) -> (512,256); padding is inert.
    w_full_p = jnp.zeros((PP, FP), jnp.float32).at[:P, :F].set(w_full)
    b_eff_p = jnp.zeros((1, FP), jnp.float32).at[:, :F].set(b_eff)
    wl_p = jnp.zeros((FP, 2), jnp.float32).at[:F, :].set(jnp.transpose(params["fc_w"]))
    return {
        "w_full": w_full_p,                                  # (512, 256)
        "b_eff": b_eff_p,                                    # (1, 256)
        "wl": wl_p,                                          # (256, 2)
        "bl": params["fc_b"].reshape(1, 2),                  # (1, 2)
    }


# --------------------------------------------------------------------- params / reference
def init_params(key):
    """Parameters in PyTorch-native layouts."""
    ks = jax.random.split(key, 9)
    p = {"embedding": jax.random.normal(ks[0], (VOCAB, E), jnp.float32)}   # nn.Embedding ~ N(0,1)
    for i, k in enumerate(KS):
        bound = (E * k) ** -0.5
        p[f"conv{k}_w"] = jax.random.uniform(ks[1 + 2 * i], (C, E, k), jnp.float32, -bound, bound)
        p[f"conv{k}_b"] = jax.random.uniform(ks[2 + 2 * i], (C,), jnp.float32, -bound, bound)
    bound = F ** -0.5
    p["fc_w"] = jax.random.uniform(ks[7], (2, F), jnp.float32, -bound, bound)   # Linear(192, 2)
    p["fc_b"] = jax.random.uniform(ks[8], (2,), jnp.float32, -bound, bound)
    return p


def reference_forward(texts, params):
    """Direct, un-folded port of the PyTorch forward (NCL Conv1d semantics)."""
    embeds = jnp.take(params["embedding"], texts, axis=0)    # (B, L, E)
    x = jnp.transpose(embeds, (0, 2, 1))                     # (B, E, L)  == .permute(0,2,1)
    pooled = []
    for k in KS:
        w = params[f"conv{k}_w"]                             # (C, E, k)
        b = params[f"conv{k}_b"]                             # (C,)
        l_out = L - k + 1
        outs = []
        for t in range(l_out):
            window = x[:, :, t:t + k]                        # (B, E, k)
            outs.append(jnp.einsum("bek,cek->bc", window, w) + b)
        conv = jnp.stack(outs, axis=-1)                      # (B, C, l_out)
        pooled.append(jnp.mean(conv, axis=-1))               # AdaptiveAvgPool1d(1).squeeze
    feat = jnp.concatenate(pooled, axis=1)                   # (B, 3C)
    feat = jnp.where(feat > 0, feat, NEG_SLOPE * feat)       # LeakyReLU
    return feat @ params["fc_w"].T + params["fc_b"]          # Linear(192, 2)


# ----------------------------------------------------------------------------- main
if __name__ == "__main__":
    key = jax.random.PRNGKey(0)
    k_param, k_text = jax.random.split(key)

    params = init_params(k_param)
    folded = prepare_params(params)                          # one-time folding
    texts = jax.random.randint(k_text, (B, L), 0, VOCAB, dtype=jnp.int32)

    out = textcnn_forward(texts, folded)
    out = jax.block_until_ready(out)

    ref = reference_forward(texts, params)
    assert out.shape == (B, 2)
    assert jnp.allclose(out, ref, atol=1e-4, rtol=1e-4), (out, ref)
    print("KERNEL_OK")
</pallas_src>

<mosaic_0001>
module attributes {stable_mosaic.version = 11 : i64} {
  func.func @textcnn_kernel(%arg0: memref<16xi32, #tpu.memory_space<smem>>, %arg1: memref<512x256xf32, #tpu.memory_space<vmem>>, %arg2: memref<1x256xf32, #tpu.memory_space<vmem>>, %arg3: memref<256x2xf32, #tpu.memory_space<vmem>>, %arg4: memref<1x2xf32, #tpu.memory_space<vmem>>, %arg5: memref<2x2xf32, #tpu.memory_space<vmem>>) attributes {dimension_semantics = [], scalar_prefetch = 0 : i64, scratch_operands = 0 : i64, tpu.core_type = #tpu.core_type<tc>} {
    %0 = tpu.iota {dimensions = array<i32: 1>} : vector<1x512xi32>
    %c0 = arith.constant 0 : index
    %1 = memref.load %arg0[%c0] : memref<16xi32, #tpu.memory_space<smem>>
    %c0_i32 = arith.constant 0 : i32
    %2 = arith.addi %1, %c0_i32 : i32
    %3 = vector.broadcast %2 : i32 to vector<1x512xi32>
    %4 = arith.cmpi eq, %0, %3 : vector<1x512xi32>
    %5 = arith.extui %4 : vector<1x512xi1> to vector<1x512xi32>
    %6 = arith.sitofp %5 : vector<1x512xi32> to vector<1x512xf32>
    %c1 = arith.constant 1 : index
    %7 = memref.load %arg0[%c1] : memref<16xi32, #tpu.memory_space<smem>>
    %c50_i32 = arith.constant 50 : i32
    %8 = arith.addi %7, %c50_i32 : i32
    %9 = vector.broadcast %8 : i32 to vector<1x512xi32>
    %10 = arith.cmpi eq, %0, %9 : vector<1x512xi32>
    %11 = arith.extui %10 : vector<1x512xi1> to vector<1x512xi32>
    %12 = arith.sitofp %11 : vector<1x512xi32> to vector<1x512xf32>
    %c2 = arith.constant 2 : index
    %13 = memref.load %arg0[%c2] : memref<16xi32, #tpu.memory_space<smem>>
    %c100_i32 = arith.constant 100 : i32
    %14 = arith.addi %13, %c100_i32 : i32
    %15 = vector.broadcast %14 : i32 to vector<1x512xi32>
    %16 = arith.cmpi eq, %0, %15 : vector<1x512xi32>
    %17 = arith.extui %16 : vector<1x512xi1> to vector<1x512xi32>
    %18 = arith.sitofp %17 : vector<1x512xi32> to vector<1x512xf32>
    %c3 = arith.constant 3 : index
    %19 = memref.load %arg0[%c3] : memref<16xi32, #tpu.memory_space<smem>>
    %c150_i32 = arith.constant 150 : i32
    %20 = arith.addi %19, %c150_i32 : i32
    %21 = vector.broadcast %20 : i32 to vector<1x512xi32>
    %22 = arith.cmpi eq, %0, %21 : vector<1x512xi32>
    %23 = arith.extui %22 : vector<1x512xi1> to vector<1x512xi32>
    %24 = arith.sitofp %23 : vector<1x512xi32> to vector<1x512xf32>
    %c4 = arith.constant 4 : index
    %25 = memref.load %arg0[%c4] : memref<16xi32, #tpu.memory_space<smem>>
    %c200_i32 = arith.constant 200 : i32
    %26 = arith.addi %25, %c200_i32 : i32
    %27 = vector.broadcast %26 : i32 to vector<1x512xi32>
    %28 = arith.cmpi eq, %0, %27 : vector<1x512xi32>
    %29 = arith.extui %28 : vector<1x512xi1> to vector<1x512xi32>
    %30 = arith.sitofp %29 : vector<1x512xi32> to vector<1x512xf32>
    %c5 = arith.constant 5 : index
    %31 = memref.load %arg0[%c5] : memref<16xi32, #tpu.memory_space<smem>>
    %c250_i32 = arith.constant 250 : i32
    %32 = arith.addi %31, %c250_i32 : i32
    %33 = vector.broadcast %32 : i32 to vector<1x512xi32>
    %34 = arith.cmpi eq, %0, %33 : vector<1x512xi32>
    %35 = arith.extui %34 : vector<1x512xi1> to vector<1x512xi32>
    %36 = arith.sitofp %35 : vector<1x512xi32> to vector<1x512xf32>
    %c6 = arith.constant 6 : index
    %37 = memref.load %arg0[%c6] : memref<16xi32, #tpu.memory_space<smem>>
    %c300_i32 = arith.constant 300 : i32
    %38 = arith.addi %37, %c300_i32 : i32
    %39 = vector.broadcast %38 : i32 to vector<1x512xi32>
    %40 = arith.cmpi eq, %0, %39 : vector<1x512xi32>
    %41 = arith.extui %40 : vector<1x512xi1> to vector<1x512xi32>
    %42 = arith.sitofp %41 : vector<1x512xi32> to vector<1x512xf32>
    %c7 = arith.constant 7 : index
    %43 = memref.load %arg0[%c7] : memref<16xi32, #tpu.memory_space<smem>>
    %c350_i32 = arith.constant 350 : i32
    %44 = arith.addi %43, %c350_i32 : i32
    %45 = vector.broadcast %44 : i32 to vector<1x512xi32>
    %46 = arith.cmpi eq, %0, %45 : vector<1x512xi32>
    %47 = arith.extui %46 : vector<1x512xi1> to vector<1x512xi32>
    %48 = arith.sitofp %47 : vector<1x512xi32> to vector<1x512xf32>
    %49 = arith.addf %6, %12 : vector<1x512xf32>
    %50 = arith.addf %18, %24 : vector<1x512xf32>
    %51 = arith.addf %30, %36 : vector<1x512xf32>
    %52 = arith.addf %42, %48 : vector<1x512xf32>
    %53 = arith.addf %49, %50 : vector<1x512xf32>
    %54 = arith.addf %51, %52 : vector<1x512xf32>
    %55 = arith.addf %53, %54 : vector<1x512xf32>
    %c8 = arith.constant 8 : index
    %56 = memref.load %arg0[%c8] : memref<16xi32, #tpu.memory_space<smem>>
    %c0_i32_0 = arith.constant 0 : i32
    %57 = arith.addi %56, %c0_i32_0 : i32
    %58 = vector.broadcast %57 : i32 to vector<1x512xi32>
    %59 = arith.cmpi eq, %0, %58 : vector<1x512xi32>
    %60 = arith.extui %59 : vector<1x512xi1> to vector<1x512xi32>
    %61 = arith.sitofp %60 : vector<1x512xi32> to vector<1x512xf32>
    %c9 = arith.constant 9 : index
    %62 = memref.load %arg0[%c9] : memref<16xi32, #tpu.memory_space<smem>>
    %c50_i32_1 = arith.constant 50 : i32
    %63 = arith.addi %62, %c50_i32_1 : i32
    %64 = vector.broadcast %63 : i32 to vector<1x512xi32>
    %65 = arith.cmpi eq, %0, %64 : vector<1x512xi32>
    %66 = arith.extui %65 : vector<1x512xi1> to vector<1x512xi32>
    %67 = arith.sitofp %66 : vector<1x512xi32> to vector<1x512xf32>
    %c10 = arith.constant 10 : index
    %68 = memref.load %arg0[%c10] : memref<16xi32, #tpu.memory_space<smem>>
    %c100_i32_2 = arith.constant 100 : i32
    %69 = arith.addi %68, %c100_i32_2 : i32
    %70 = vector.broadcast %69 : i32 to vector<1x512xi32>
    %71 = arith.cmpi eq, %0, %70 : vector<1x512xi32>
    %72 = arith.extui %71 : vector<1x512xi1> to vector<1x512xi32>
    %73 = arith.sitofp %72 : vector<1x512xi32> to vector<1x512xf32>
    %c11 = arith.constant 11 : index
    %74 = memref.load %arg0[%c11] : memref<16xi32, #tpu.memory_space<smem>>
    %c150_i32_3 = arith.constant 150 : i32
    %75 = arith.addi %74, %c150_i32_3 : i32
    %76 = vector.broadcast %75 : i32 to vector<1x512xi32>
    %77 = arith.cmpi eq, %0, %76 : vector<1x512xi32>
    %78 = arith.extui %77 : vector<1x512xi1> to vector<1x512xi32>
    %79 = arith.sitofp %78 : vector<1x512xi32> to vector<1x512xf32>
    %c12 = arith.constant 12 : index
    %80 = memref.load %arg0[%c12] : memref<16xi32, #tpu.memory_space<smem>>
    %c200_i32_4 = arith.constant 200 : i32
    %81 = arith.addi %80, %c200_i32_4 : i32
    %82 = vector.broadcast %81 : i32 to vector<1x512xi32>
    %83 = arith.cmpi eq, %0, %82 : vector<1x512xi32>
    %84 = arith.extui %83 : vector<1x512xi1> to vector<1x512xi32>
    %85 = arith.sitofp %84 : vector<1x512xi32> to vector<1x512xf32>
    %c13 = arith.constant 13 : index
    %86 = memref.load %arg0[%c13] : memref<16xi32, #tpu.memory_space<smem>>
    %c250_i32_5 = arith.constant 250 : i32
    %87 = arith.addi %86, %c250_i32_5 : i32
    %88 = vector.broadcast %87 : i32 to vector<1x512xi32>
    %89 = arith.cmpi eq, %0, %88 : vector<1x512xi32>
    %90 = arith.extui %89 : vector<1x512xi1> to vector<1x512xi32>
    %91 = arith.sitofp %90 : vector<1x512xi32> to vector<1x512xf32>
    %c14 = arith.constant 14 : index
    %92 = memref.load %arg0[%c14] : memref<16xi32, #tpu.memory_space<smem>>
    %c300_i32_6 = arith.constant 300 : i32
    %93 = arith.addi %92, %c300_i32_6 : i32
    %94 = vector.broadcast %93 : i32 to vector<1x512xi32>
    %95 = arith.cmpi eq, %0, %94 : vector<1x512xi32>
    %96 = arith.extui %95 : vector<1x512xi1> to vector<1x512xi32>
    %97 = arith.sitofp %96 : vector<1x512xi32> to vector<1x512xf32>
    %c15 = arith.constant 15 : index
    %98 = memref.load %arg0[%c15] : memref<16xi32, #tpu.memory_space<smem>>
    %c350_i32_7 = arith.constant 350 : i32
    %99 = arith.addi %98, %c350_i32_7 : i32
    %100 = vector.broadcast %99 : i32 to vector<1x512xi32>
    %101 = arith.cmpi eq, %0, %100 : vector<1x512xi32>
    %102 = arith.extui %101 : vector<1x512xi1> to vector<1x512xi32>
    %103 = arith.sitofp %102 : vector<1x512xi32> to vector<1x512xf32>
    %104 = arith.addf %61, %67 : vector<1x512xf32>
    %105 = arith.addf %73, %79 : vector<1x512xf32>
    %106 = arith.addf %85, %91 : vector<1x512xf32>
    %107 = arith.addf %97, %103 : vector<1x512xf32>
    %108 = arith.addf %104, %105 : vector<1x512xf32>
    %109 = arith.addf %106, %107 : vector<1x512xf32>
    %110 = arith.addf %108, %109 : vector<1x512xf32>
    %111 = tpu.concatenate %55, %110 in 0 : vector<1x512xf32>, vector<1x512xf32> -> vector<2x512xf32>
    %c0_8 = arith.constant 0 : index
    %c0_9 = arith.constant 0 : index
    %112 = vector.load %arg1[%c0_8, %c0_9] : memref<512x256xf32, #tpu.memory_space<vmem>>, vector<512x256xf32>
    %cst = arith.constant dense<0.000000e+00> : vector<2x256xf32>
    %113 = tpu.matmul %111, %112, %cst {dimension_numbers = #tpu.dot_dimension_numbers<[1], [0], [0], [1], [0, 0, 1, 1], [], []>} : vector<2x512xf32>, vector<512x256xf32>, vector<2x256xf32> -> vector<2x256xf32>
    %c0_10 = arith.constant 0 : index
    %c0_11 = arith.constant 0 : index
    %114 = vector.load %arg2[%c0_10, %c0_11] : memref<1x256xf32, #tpu.memory_space<vmem>>, vector<1x256xf32>
    %115 = vector.broadcast %114 : vector<1x256xf32> to vector<2x256xf32>
    %116 = arith.addf %113, %115 : vector<2x256xf32>
    %cst_12 = arith.constant 0.000000e+00 : f32
    %117 = vector.broadcast %cst_12 : f32 to vector<2x256xf32>
    %118 = arith.cmpf ogt, %116, %117 : vector<2x256xf32>
    %cst_13 = arith.constant 0.00999999977 : f32
    %119 = vector.broadcast %cst_13 : f32 to vector<2x256xf32>
    %120 = arith.mulf %119, %116 : vector<2x256xf32>
    %121 = arith.select %118, %116, %120 : vector<2x256xi1>, vector<2x256xf32>
    %c0_14 = arith.constant 0 : index
    %c0_15 = arith.constant 0 : index
    %122 = vector.load %arg3[%c0_14, %c0_15] : memref<256x2xf32, #tpu.memory_space<vmem>>, vector<256x2xf32>
    %cst_16 = arith.constant dense<0.000000e+00> : vector<2x2xf32>
    %123 = tpu.matmul %121, %122, %cst_16 {dimension_numbers = #tpu.dot_dimension_numbers<[1], [0], [0], [1], [0, 0, 1, 1], [], []>} : vector<2x256xf32>, vector<256x2xf32>, vector<2x2xf32> -> vector<2x2xf32>
    %c0_17 = arith.constant 0 : index
    %c0_18 = arith.constant 0 : index
    %124 = vector.load %arg4[%c0_17, %c0_18] : memref<1x2xf32, #tpu.memory_space<vmem>>, vector<1x2xf32>
    %125 = vector.broadcast %124 : vector<1x2xf32> to vector<2x2xf32>
    %126 = arith.addf %123, %125 : vector<2x2xf32>
    %c0_19 = arith.constant 0 : index
    %c0_20 = arith.constant 0 : index
    %127 = vector.load %arg5[%c0_19, %c0_20] : memref<2x2xf32, #tpu.memory_space<vmem>>, vector<2x2xf32>
    tpu.vector_store %arg5[%c0_19, %c0_20], %126 {strides = array<i32>} : memref<2x2xf32, #tpu.memory_space<vmem>>, vector<2x2xf32>,
    return
  }
}

</mosaic_0001>

<bundles_post_ra>
// kernel: tpu_custom_call.1
= control target key start
LH: loop header
LB: loop body
LE: loop exit
PB: predicated region body
PF: predicated region fallthrough
CT: control target
= control target key end

     0   :  { %10 = vsyncpa [#allocation5], 0  ;;  %s1490_s0 = inlined_call_operand.vmem [shape: s32[16], index: 0, kind: input, shape index: {}]   ;;  %s1491_s1 = inlined_call_operand.hbm [shape: f32[512,256], index: 1, kind: input, shape index: {}]   ;;  %s1492_s2 = inlined_call_operand.vmem [shape: f32[1,256], index: 2, kind: input, shape index: {}]   ;;  %s1493_s3 = inlined_call_operand.vmem [shape: f32[256,2], index: 3, kind: input, shape index: {}]   ;;  %s1494_s4 = inlined_call_operand.vmem [shape: f32[1,2], index: 4, kind: input, shape index: {}]   ;;  %s1495_s5 = inlined_call_operand.hbm [shape: f32[2,2], index: 5, kind: output, shape index: {}]  }
   0x1   :  { %11 = vsyncpa [#allocation3], 0 }
   0x2   :  { %12 = vsyncpa [#allocation4], 0  ;;  %s19_s20 = sshll.u32 %s1490_s0, 4  ;;  %s20_s20 = int_to_ptr.vmem [resolvable:$true] %s19_s20 }
   0x3   :  { %s888_s21 = scalar_lea.vmem %s20_s20, 16  ;;  %p893_p1 = scmp.lt.s32.totalorder %s20_s20, %s20_s20 }
   0x4   :  { %p889_p0 = scmp.ne.s32.totalorder %s20_s20, %s888_s21  ;;  %p894_p2 = scmp.lt.s32.totalorder %s888_s21, %s888_s21 }
   0x6   :  { %p895_p3 = por %p894_p2, %p893_p1 }
   0x8   :  { %p896_p4 = pnand %p895_p3, %p889_p0 }
   0xa   :  { %899 = shalt.err (!%p896_p4)
}
   0xb   :  { %s946_s22 = smov [#allocation2]   ;;  %s947_s23 = smov [#allocation6]  }
   0xc   :  { %22 = dma.vmem_to_smem %s20_s20, 16, %s946_s22, [#allocation5]  }
   0xd   :  { %s28_s24 = sshll.u32 %s947_s23, 4  ;;  %s29_s24 = int_to_ptr.vmem [resolvable:$true] %s28_s24 }
   0xe   :  { %s908_s25 = scalar_lea.vmem %s29_s24, 16384  ;;  %p913_p6 = scmp.lt.s32.totalorder %s29_s24, %s29_s24 }
   0xf   :  { %p909_p5 = scmp.ne.s32.totalorder %s29_s24, %s908_s25  ;;  %p914_p7 = scmp.lt.s32.totalorder %s908_s25, %s908_s25 }
  0x11   :  { %p915_p8 = por %p914_p7, %p913_p6 }
  0x13   :  { %p916_p9 = pnand %p915_p8, %p909_p5 }
  0x15   :  { %919 = shalt.err (!%p916_p9)
}
  0x16   :  { %s948_s0 = smov 256   ;;  %s949_s26 = smov 16  }
  0x17   :  { %34 = dma.hbm_to_vmem [thread:$0]  %s1491_s1, 16384, %s29_s24, [#allocation3], %s948_s0, %s948_s0, %s949_s26  }
  0x18   :  { %940 = dma.done.wait [#allocation5], 16  }
  0x19   :  { %941 = vsyncadd [#allocation5], 4294967280 }
  0x1a   :  { %942 = dma.done.wait [#allocation3], 16384  }
  0x1b   :  { %943 = vsyncadd [#allocation3], 4294950912 }
  0x1c   :  { %47 = sfence }
  0x1d   :  { %v383_v0 = vld [vmem:[#allocation6 + $0xf8] sm:$0xff]  ;;  %v382_v2 = vld [vmem:[#allocation6 + $0xf0] sm:$0xff]  ;;  %v48_v3 = vlaneseq  ;;  %s988_s29 = sld [smem:[#allocation2]]  ;;  %v381_v5 = vld [vmem:[#allocation6 + $0xe8] sm:$0xff]  ;;  %v950_v33 = vmov 0.0  }
  0x1e   :  { %v447_v1 = vld [vmem:[#allocation6 + $0x2f8] sm:$0xff]  ;;  %492 = vmatprep.subr.mxu0 %v383_v0  ;;  %v446_v4 = vld [vmem:[#allocation6 + $0x2f0] sm:$0xff]  ;;  %v445_v6 = vld [vmem:[#allocation6 + $0x2e8] sm:$0xff]  ;;  %s990_s30 = sld [smem:[#allocation2 + $0x1]] }
  0x1f   :  { %563 = vmatprep.subr.mxu1 %v447_v1  ;;  %493 = vmatpush1.msra.mxu0 %v382_v2  ;;  %v380_v7 = vld [vmem:[#allocation6 + $0xe0] sm:$0xff]  ;;  %v379_v9 = vld [vmem:[#allocation6 + $0xd8] sm:$0xff]  ;;  %v993_v10 = vand.u32 127, %v48_v3  ;;  %s995_s1 = sld [smem:[#allocation2 + $0x2]]  ;;  %v378_v12 = vld [vmem:[#allocation6 + $0xd0] sm:$0xff] }
  0x20   :  { %564 = vmatpush1.msra.mxu1 %v446_v4  ;;  %v444_v8 = vld [vmem:[#allocation6 + $0x2e0] sm:$0xff]  ;;  %494 = vmatprep.subr.mxu0 %v381_v5  ;;  %v443_v11 = vld [vmem:[#allocation6 + $0x2d8] sm:$0xff]  ;;  %v442_v13 = vld [vmem:[#allocation6 + $0x2d0] sm:$0xff]  ;;  %s997_s6 = sld [smem:[#allocation2 + $0x3]] }
  0x21   :  { %565 = vmatprep.subr.mxu1 %v445_v6  ;;  %495 = vmatpush1.msra.mxu0 %v380_v7  ;;  %v377_v14 = vld [vmem:[#allocation6 + $0xc8] sm:$0xff]  ;;  %v1000_v16 = vadd.s32 128, %v993_v10  ;;  %s1002_s7 = sld [smem:[#allocation2 + $0x4]]  ;;  %v376_v17 = vld [vmem:[#allocation6 + $0xc0] sm:$0xff]  ;;  %v375_v19 = vld [vmem:[#allocation6 + $0xb8] sm:$0xff]  ;;  %v1017_v24 = vadd.s32 384, %v993_v10 }
  0x22   :  { %566 = vmatpush1.msra.mxu1 %v444_v8  ;;  %v441_v15 = vld [vmem:[#allocation6 + $0x2c8] sm:$0xff]  ;;  %496 = vmatprep.subr.mxu0 %v379_v9  ;;  %v440_v18 = vld [vmem:[#allocation6 + $0x2c0] sm:$0xff]  ;;  %s1004_s8 = sld [smem:[#allocation2 + $0x5]]  ;;  %v439_v20 = vld [vmem:[#allocation6 + $0x2b8] sm:$0xff]  ;;  %v1105_v8 = vadd.s32 256, %v993_v10 }
  0x23   :  { %567 = vmatprep.subr.mxu1 %v443_v11  ;;  %497 = vmatpush1.msra.mxu0 %v378_v12  ;;  %v1007_v21 = vstv %s988_s29  ;;  %s1009_s9 = sld [smem:[#allocation2 + $0x6]]  ;;  %v374_v22 = vld [vmem:[#allocation6 + $0xb0] sm:$0xff]  ;;  %v373_v25 = vld [vmem:[#allocation6 + $0xa8] sm:$0xff]  ;;  %v372_v28 = vld [vmem:[#allocation6 + $0xa0] sm:$0xff] }
  0x24   :  { %568 = vmatpush1.msra.mxu1 %v442_v13  ;;  %498 = vmatprep.subr.mxu0 %v377_v14  ;;  %v438_v23 = vld [vmem:[#allocation6 + $0x2b0] sm:$0xff]  ;;  %vm56_vm0 = vcmp.eq.s32.totalorder %v1000_v16, %v1007_v21  ;;  %s68_s10 = sadd.s32 50, %s990_s30  ;;  %s1014_s11 = sld [smem:[#allocation2 + $0x7]]  ;;  %v437_v26 = vld [vmem:[#allocation6 + $0x2a8] sm:$0xff]  ;;  %v436_v29 = vld [vmem:[#allocation6 + $0x2a0] sm:$0xff]  ;;  %vm58_vm4 = vcmp.eq.s32.totalorder %v1017_v24, %v1007_v21 }
  0x25   :  { %569 = vmatprep.subr.mxu1 %v441_v15  ;;  %499 = vmatpush1.msra.mxu0 %v376_v17  ;;  %v1019_v27 = vstv %s68_s10  ;;  %s83_s12 = sadd.s32 100, %s995_s1  ;;  %s1027_s14 = sld [smem:[#allocation2 + $0x8]]  ;;  %v371_v31 = vld [vmem:[#allocation6 + $0x98] sm:$0xff]  ;;  %v768_v34 = vsel %vm56_vm0, 1.0, %v950_v33  ;;  %v370_v37 = vld [vmem:[#allocation6 + $0x90] sm:$0xff]  ;;  %v369_v40 = vld [vmem:[#allocation6 + $0x88] sm:$0xff] }
  0x26   :  { %570 = vmatpush1.msra.mxu1 %v440_v18  ;;  %500 = vmatprep.subr.mxu0 %v375_v19  ;;  %vm71_vm1 = vcmp.eq.s32.totalorder %v1000_v16, %v1019_v27  ;;  %v1024_v30 = vstv %s83_s12  ;;  %s98_s13 = sadd.s32 150, %s997_s6  ;;  %v435_v32 = vld [vmem:[#allocation6 + $0x298] sm:$0xff]  ;;  %v434_v38 = vld [vmem:[#allocation6 + $0x290] sm:$0xff]  ;;  %v433_v41 = vld [vmem:[#allocation6 + $0x288] sm:$0xff]  ;;  %vm73_vm7 = vcmp.eq.s32.totalorder %v1017_v24, %v1019_v27  ;;  %s1069_s19 = sld [smem:[#allocation2 + $0x9]]  ;;  %v770_v62 = vsel %vm58_vm4, 1.0, %v950_v33 }
  0x27   :  { %571 = vmatprep.subr.mxu1 %v439_v20  ;;  %501 = vmatpush1.msra.mxu0 %v374_v22  ;;  %v773_v35 = vsel %vm71_vm1, 1.0, %v950_v33  ;;  %vm86_vm2 = vcmp.eq.s32.totalorder %v1000_v16, %v1024_v30  ;;  %v1036_v36 = vstv %s98_s13  ;;  %s113_s15 = sadd.s32 200, %s1002_s7  ;;  %v368_v45 = vld [vmem:[#allocation6 + $0x80] sm:$0xff]  ;;  %v367_v49 = vld [vmem:[#allocation6 + $0x78] sm:$0xff]  ;;  %v366_v54 = vld [vmem:[#allocation6 + $0x70] sm:$0xff]  ;;  %s1074_s20 = sld [smem:[#allocation2 + $0xa]]  ;;  %vm88_vm10 = vcmp.eq.s32.totalorder %v1017_v24, %v1024_v30 }
  0x28   :  { %572 = vmatpush1.msra.mxu1 %v438_v23  ;;  %502 = vmatprep.subr.mxu0 %v373_v25  ;;  %vm101_vm3 = vcmp.eq.s32.totalorder %v1000_v16, %v1036_v36  ;;  %v1041_v39 = vstv %s113_s15  ;;  %s128_s16 = sadd.s32 250, %s1004_s8  ;;  %v778_v42 = vsel %vm86_vm2, 1.0, %v950_v33  ;;  %v432_v46 = vld [vmem:[#allocation6 + $0x280] sm:$0xff]  ;;  %v173_v48 = vadd.f32 %v773_v35, %v768_v34  ;;  %v431_v50 = vld [vmem:[#allocation6 + $0x278] sm:$0xff]  ;;  %v430_v55 = vld [vmem:[#allocation6 + $0x270] sm:$0xff]  ;;  %s1082_s21 = sld [smem:[#allocation2 + $0xb]] }
  0x29   :  { %573 = vmatprep.subr.mxu1 %v437_v26  ;;  %503 = vmatpush1.msra.mxu0 %v372_v28  ;;  %v783_v43 = vsel %vm101_vm3, 1.0, %v950_v33  ;;  %vm116_vm5 = vcmp.eq.s32.totalorder %v1000_v16, %v1041_v39  ;;  %v1050_v44 = vstv %s128_s16  ;;  %s143_s17 = sadd.s32 300, %s1009_s9  ;;  %v365_v58 = vld [vmem:[#allocation6 + $0x68] sm:$0xff]  ;;  %vm103_vm11 = vcmp.eq.s32.totalorder %v1017_v24, %v1036_v36  ;;  %v364_v63 = vld [vmem:[#allocation6 + $0x60] sm:$0xff]  ;;  %s1092_s22 = sld [smem:[#allocation2 + $0xc]]  ;;  %v363_v5 = vld [vmem:[#allocation6 + $0x58] sm:$0xff] }
  0x2a   :  { %574 = vmatpush1.msra.mxu1 %v436_v29  ;;  %504 = vmatprep.subr.mxu0 %v371_v31  ;;  %vm131_vm6 = vcmp.eq.s32.totalorder %v1000_v16, %v1050_v44  ;;  %v1055_v47 = vstv %s143_s17  ;;  %s158_s18 = sadd.s32 350, %s1014_s11  ;;  %v788_v51 = vsel %vm116_vm5, 1.0, %v950_v33  ;;  %v177_v57 = vadd.f32 %v783_v43, %v778_v42  ;;  %v429_v59 = vld [vmem:[#allocation6 + $0x268] sm:$0xff]  ;;  %v428_v0 = vld [vmem:[#allocation6 + $0x260] sm:$0xff]  ;;  %v427_v6 = vld [vmem:[#allocation6 + $0x258] sm:$0xff]  ;;  %s1098_s23 = sld [smem:[#allocation2 + $0xd]] }
  0x2b   :  { %575 = vmatprep.subr.mxu1 %v435_v32  ;;  %505 = vmatpush1.msra.mxu0 %v370_v37  ;;  %v793_v52 = vsel %vm131_vm6, 1.0, %v950_v33  ;;  %vm146_vm8 = vcmp.eq.s32.totalorder %v1000_v16, %v1055_v47  ;;  %v1067_v53 = vstv %s158_s18  ;;  %v1080_v61 = vstv %s1027_s14  ;;  %v362_v9 = vld [vmem:[#allocation6 + $0x50] sm:$0xff]  ;;  %s1109_s24 = sld [smem:[#allocation2 + $0xe]]  ;;  %v361_v14 = vld [vmem:[#allocation6 + $0x48] sm:$0xff]  ;;  %v360_v19 = vld [vmem:[#allocation6 + $0x40] sm:$0xff]  ;;  %s951_s18 = smov [#allocation7]  }
  0x2c   :  { %576 = vmatpush1.msra.mxu1 %v434_v38  ;;  %506 = vmatprep.subr.mxu0 %v369_v40  ;;  %v798_v56 = vsel %vm146_vm8, 1.0, %v950_v33  ;;  %vm161_vm9 = vcmp.eq.s32.totalorder %v1000_v16, %v1067_v53  ;;  %v181_v1 = vadd.f32 %v793_v52, %v788_v51  ;;  %vm203_vm12 = vcmp.eq.s32.totalorder %v1000_v16, %v1080_v61  ;;  %v426_v11 = vld [vmem:[#allocation6 + $0x250] sm:$0xff]  ;;  %v425_v15 = vld [vmem:[#allocation6 + $0x248] sm:$0xff]  ;;  %s215_s25 = sadd.s32 50, %s1069_s19  ;;  %s1126_s0 = sld [smem:[#allocation2 + $0xf]]  ;;  %v424_v20 = vld [vmem:[#allocation6 + $0x240] sm:$0xff] }
  0x2d   :  { %577 = vmatprep.subr.mxu1 %v433_v41  ;;  %507 = vmatpush1.msra.mxu0 %v368_v45  ;;  %v803_v60 = vsel %vm161_vm9, 1.0, %v950_v33  ;;  %v775_v4 = vsel %vm73_vm7, 1.0, %v950_v33  ;;  %v780_v7 = vsel %vm88_vm10, 1.0, %v950_v33  ;;  %v1107_v12 = vadd.f32 %v177_v57, %v173_v48  ;;  %s230_s26 = sadd.s32 100, %s1074_s20  ;;  %v359_v26 = vld [vmem:[#allocation6 + $0x38] sm:$0xff]  ;;  %v358_v34 = vld [vmem:[#allocation6 + $0x30] sm:$0xff] }
  0x2e   :  { %578 = vmatpush1.msra.mxu1 %v432_v46  ;;  %508 = vmatprep.subr.mxu0 %v367_v49  ;;  %v185_v2 = vadd.f32 %v803_v60, %v798_v56  ;;  %v785_v13 = vsel %vm103_vm11, 1.0, %v950_v33  ;;  %vm118_vm13 = vcmp.eq.s32.totalorder %v1017_v24, %v1041_v39  ;;  %vm133_vm14 = vcmp.eq.s32.totalorder %v1017_v24, %v1050_v44  ;;  %v423_v28 = vld [vmem:[#allocation6 + $0x238] sm:$0xff]  ;;  %s245_s27 = sadd.s32 150, %s1082_s21  ;;  %v422_v35 = vld [vmem:[#allocation6 + $0x230] sm:$0xff]  ;;  %v357_v41 = vld [vmem:[#allocation6 + $0x28] sm:$0xff]  ;;  %s757_s19 = sshll.u32 %s951_s18, 4  ;;  %s758_s19 = int_to_ptr.vmem [resolvable:$true] %s757_s19 }
  0x2f   :  { %579 = vmatprep.subr.mxu1 %v431_v50  ;;  %509 = vmatpush1.msra.mxu0 %v366_v54  ;;  %v1123_v17 = vsel %vm203_vm12, 1.0, %v950_v33  ;;  %vm148_vm15 = vcmp.eq.s32.totalorder %v1017_v24, %v1055_v47  ;;  %vm163_vm0 = vcmp.eq.s32.totalorder %v1017_v24, %v1067_v53  ;;  %v1132_v18 = vadd.f32 %v775_v4, %v770_v62  ;;  %s260_s28 = sadd.s32 200, %s1092_s22  ;;  %v421_v42 = vld [vmem:[#allocation6 + $0x228] sm:$0xff]  ;;  %v356_v48 = vld [vmem:[#allocation6 + $0x20] sm:$0xff]  ;;  %v355_v54 = vld [vmem:[#allocation6 + $0x18] sm:$0xff]  ;;  %s920_s20 = scalar_lea.vmem %s758_s19, 32 }
  0x30   :  { %580 = vmatpush1.msra.mxu1 %v430_v55  ;;  %510 = vmatprep.subr.mxu0 %v365_v58  ;;  %v1134_v22 = vadd.f32 %v185_v2, %v181_v1  ;;  %v1136_v23 = vstv %s215_s25  ;;  %v1139_v25 = vadd.f32 %v785_v13, %v780_v7  ;;  %vm205_vm1 = vcmp.eq.s32.totalorder %v1017_v24, %v1080_v61  ;;  %s275_s29 = sadd.s32 250, %s1098_s23  ;;  %v420_v49 = vld [vmem:[#allocation6 + $0x220] sm:$0xff]  ;;  %v419_v55 = vld [vmem:[#allocation6 + $0x218] sm:$0xff]  ;;  %v418_v60 = vld [vmem:[#allocation6 + $0x210] sm:$0xff]  ;;  %p921_p10 = scmp.ne.s32.totalorder %s758_s19, %s920_s20 }
  0x31   :  { %581 = vmatprep.subr.mxu1 %v429_v59  ;;  %511 = vmatpush1.msra.mxu0 %v364_v63  ;;  %vm218_vm2 = vcmp.eq.s32.totalorder %v1000_v16, %v1136_v23  ;;  %v1145_v29 = vstv %s230_s26  ;;  %v790_v31 = vsel %vm118_vm13, 1.0, %v950_v33  ;;  %v795_v32 = vsel %vm133_vm14, 1.0, %v950_v33  ;;  %s290_s30 = sadd.s32 300, %s1109_s24  ;;  %v354_v59 = vld [vmem:[#allocation6 + $0x10] sm:$0xff]  ;;  %v353_v1 = vld [vmem:[#allocation6 + $0x8] sm:$0xff]  ;;  %v352_v7 = vld [vmem:[#allocation6] sm:$0xff]  ;;  %p925_p11 = scmp.lt.s32.totalorder %s758_s19, %s758_s19 }
  0x32   :  { %582 = vmatpush1.msra.mxu1 %v428_v0  ;;  %512 = vmatprep.subr.mxu0 %v363_v5  ;;  %v813_v37 = vsel %vm218_vm2, 1.0, %v950_v33  ;;  %vm233_vm3 = vcmp.eq.s32.totalorder %v1000_v16, %v1145_v29  ;;  %v1159_v38 = vstv %s245_s27  ;;  %v800_v40 = vsel %vm148_vm15, 1.0, %v950_v33  ;;  %s305_s1 = sadd.s32 350, %s1126_s0  ;;  %v417_v2 = vld [vmem:[#allocation6 + $0x208] sm:$0xff]  ;;  %p926_p12 = scmp.lt.s32.totalorder %s920_s20, %s920_s20 }
  0x33   :  { %583 = vmatprep.subr.mxu1 %v427_v6  ;;  %513 = vmatpush1.msra.mxu0 %v362_v9  ;;  %v818_v43 = vsel %vm233_vm3, 1.0, %v950_v33  ;;  %vm248_vm4 = vcmp.eq.s32.totalorder %v1000_v16, %v1159_v38  ;;  %v1169_v45 = vstv %s260_s28  ;;  %v805_v46 = vsel %vm163_vm0, 1.0, %v950_v33  ;;  %v416_v9 = vld [vmem:[#allocation6 + $0x200] sm:$0xff] }
  0x34   :  { %584 = vmatpush1.msra.mxu1 %v426_v11  ;;  %514 = vmatprep.subr.mxu0 %v361_v14  ;;  %vm55_vm5 = vcmp.eq.s32.totalorder %v993_v10, %v1007_v21  ;;  %vm70_vm6 = vcmp.eq.s32.totalorder %v993_v10, %v1019_v27  ;;  %vm85_vm7 = vcmp.eq.s32.totalorder %v993_v10, %v1024_v30  ;;  %v823_v50 = vsel %vm248_vm4, 1.0, %v950_v33  ;;  %p927_p13 = por %p926_p12, %p925_p11 }
  0x35   :  { %585 = vmatprep.subr.mxu1 %v425_v15  ;;  %515 = vmatpush1.msra.mxu0 %v360_v19  ;;  %vm263_vm8 = vcmp.eq.s32.totalorder %v1000_v16, %v1169_v45  ;;  %v1185_v51 = vstv %s275_s29  ;;  %v183_v52 = vadd.f32 %v795_v32, %v790_v31  ;;  %vm100_vm9 = vcmp.eq.s32.totalorder %v993_v10, %v1036_v36  ;;  %v479_v15 = vld [vmem:[#allocation6 + $0x3f8] sm:$0xff]  ;;  %v414_v19 = vld [vmem:[#allocation6 + $0x1f0] sm:$0xff]  ;;  %v413_v31 = vld [vmem:[#allocation6 + $0x1e8] sm:$0xff] }
  0x36   :  { %586 = vmatpush1.msra.mxu1 %v424_v20  ;;  %516 = vmatprep.subr.mxu0 %v359_v26  ;;  %vm115_vm10 = vcmp.eq.s32.totalorder %v993_v10, %v1041_v39  ;;  %v828_v56 = vsel %vm263_vm8, 1.0, %v950_v33  ;;  %vm278_vm11 = vcmp.eq.s32.totalorder %v1000_v16, %v1185_v51  ;;  %v1195_v57 = vstv %s290_s30  ;;  %v478_v20 = vld [vmem:[#allocation6 + $0x3f0] sm:$0xff]  ;;  %v477_v32 = vld [vmem:[#allocation6 + $0x3e8] sm:$0xff]  ;;  %p928_p0 = pnand %p927_p13, %p921_p10 }
  0x37   :  { %587 = vmatprep.subr.mxu1 %v423_v28  ;;  %517 = vmatpush1.msra.mxu0 %v358_v34  ;;  %v320_v58 = vadd.f32 %v813_v37, %v1123_v17  ;;  %vm130_vm12 = vcmp.eq.s32.totalorder %v993_v10, %v1050_v44  ;;  %v833_v62 = vsel %vm278_vm11, 1.0, %v950_v33  ;;  %vm293_vm13 = vcmp.eq.s32.totalorder %v1000_v16, %v1195_v57  ;;  %v412_v37 = vld [vmem:[#allocation6 + $0x1e0] sm:$0xff] }
  0x38   :  { %588 = vmatpush1.msra.mxu1 %v422_v35  ;;  %518 = vmatprep.subr.mxu0 %v357_v41  ;;  %v1204_v63 = vstv %s305_s1  ;;  %v324_v0 = vadd.f32 %v823_v50, %v818_v43  ;;  %v838_v4 = vsel %vm293_vm13, 1.0, %v950_v33  ;;  %v187_v5 = vadd.f32 %v805_v46, %v800_v40  ;;  %v476_v40 = vld [vmem:[#allocation6 + $0x3e0] sm:$0xff]  ;;  %v411_v46 = vld [vmem:[#allocation6 + $0x1d8] sm:$0xff] }
  0x39   :  { %589 = vmatprep.subr.mxu1 %v421_v42  ;;  %519 = vmatpush1.msra.mxu0 %v356_v48  ;;  %vm308_vm14 = vcmp.eq.s32.totalorder %v1000_v16, %v1204_v63  ;;  %v1211_v6 = vadd.f32 %v1139_v25, %v1132_v18  ;;  %v328_v13 = vadd.f32 %v833_v62, %v828_v56  ;;  %v810_v14 = vsel %vm205_vm1, 1.0, %v950_v33  ;;  %v415_v16 = vld [vmem:[#allocation6 + $0x1f8] sm:$0xff]  ;;  %v474_v56 = vld [vmem:[#allocation6 + $0x3d0] sm:$0xff]  ;;  %v409_v62 = vld [vmem:[#allocation6 + $0x1c8] sm:$0xff] }
  0x3a   :  { %590 = vmatpush1.msra.mxu1 %v420_v49  ;;  %520 = vmatprep.subr.mxu0 %v355_v54  ;;  %v843_v11 = vsel %vm308_vm14, 1.0, %v950_v33  ;;  %vm220_vm15 = vcmp.eq.s32.totalorder %v1017_v24, %v1136_v23  ;;  %vm235_vm0 = vcmp.eq.s32.totalorder %v1017_v24, %v1145_v29  ;;  %vm250_vm2 = vcmp.eq.s32.totalorder %v1017_v24, %v1159_v38  ;;  %v475_v48 = vld [vmem:[#allocation6 + $0x3d8] sm:$0xff] }
  0x3b   :  { %591 = vmatprep.subr.mxu1 %v419_v55  ;;  %521 = vmatpush1.msra.mxu0 %v354_v59  ;;  %v332_v17 = vadd.f32 %v843_v11, %v838_v4  ;;  %v815_v18 = vsel %vm220_vm15, 1.0, %v950_v33  ;;  %v1225_v25 = vadd.f32 %v324_v0, %v320_v58  ;;  %v820_v26 = vsel %vm235_vm0, 1.0, %v950_v33  ;;  %v410_v55 = vld [vmem:[#allocation6 + $0x1d0] sm:$0xff]  ;;  %v473_v0 = vld [vmem:[#allocation6 + $0x3c8] sm:$0xff] }
  0x3c   :  { %592 = vmatpush1.msra.mxu1 %v418_v60  ;;  %522 = vmatprep.subr.mxu0 %v353_v1  ;;  %v825_v28 = vsel %vm250_vm2, 1.0, %v950_v33  ;;  %vm265_vm1 = vcmp.eq.s32.totalorder %v1017_v24, %v1169_v45  ;;  %v195_v34 = vadd.f32 %v187_v5, %v183_v52  ;;  %vm280_vm3 = vcmp.eq.s32.totalorder %v1017_v24, %v1185_v51  ;;  %v408_v5 = vld [vmem:[#allocation6 + $0x1c0] sm:$0xff] }
  0x3d   :  { %593 = vmatprep.subr.mxu1 %v417_v2  ;;  %523 = vmatpush1.msra.mxu0 %v352_v7  ;;  %v830_v35 = vsel %vm265_vm1, 1.0, %v950_v33  ;;  %vm295_vm4 = vcmp.eq.s32.totalorder %v1017_v24, %v1195_v57  ;;  %v835_v41 = vsel %vm280_vm3, 1.0, %v950_v33  ;;  %vm310_vm8 = vcmp.eq.s32.totalorder %v1017_v24, %v1204_v63  ;;  %v472_v7 = vld [vmem:[#allocation6 + $0x3c0] sm:$0xff] }
  0x3e   :  { %594 = vmatpush1.msra.mxu1 %v416_v9  ;;  %524 = vmatprep.subr.mxu0 %v415_v16  ;;  %v840_v42 = vsel %vm295_vm4, 1.0, %v950_v33  ;;  %v322_v43 = vadd.f32 %v815_v18, %v810_v14  ;;  %v340_v49 = vadd.f32 %v332_v17, %v328_v13  ;;  %v845_v50 = vsel %vm310_vm8, 1.0, %v950_v33  ;;  %v407_v13 = vld [vmem:[#allocation6 + $0x1b8] sm:$0xff] }
  0x3f   :  { %595 = vmatprep.subr.mxu1 %v479_v15  ;;  %525 = vmatpush2.msra.mxu0 %v414_v19  ;;  %v326_v52 = vadd.f32 %v825_v28, %v820_v26  ;;  %v330_v54 = vadd.f32 %v835_v41, %v830_v35  ;;  %v334_v58 = vadd.f32 %v845_v50, %v840_v42  ;;  %v767_v24 = vsel %vm55_vm5, 1.0, %v950_v33  ;;  %v471_v14 = vld [vmem:[#allocation6 + $0x3b8] sm:$0xff]  ;;  %v406_v19 = vld [vmem:[#allocation6 + $0x1b0] sm:$0xff]  ;;  %v469_v35 = vld [vmem:[#allocation6 + $0x3a8] sm:$0xff] }
  0x40   :  { %596 = vmatpush2.msra.mxu1 %v478_v20  ;;  %526 = vmatprep.subr.mxu0 %v413_v31  ;;  %v772_v59 = vsel %vm70_vm6, 1.0, %v950_v33  ;;  %v777_v60 = vsel %vm85_vm7, 1.0, %v950_v33  ;;  %v782_v2 = vsel %vm100_vm9, 1.0, %v950_v33  ;;  %v787_v4 = vsel %vm115_vm10, 1.0, %v950_v33  ;;  %v470_v20 = vld [vmem:[#allocation6 + $0x3b0] sm:$0xff]  ;;  %v467_v41 = vld [vmem:[#allocation6 + $0x398] sm:$0xff] }
  0x41   :  { %597 = vmatprep.subr.mxu1 %v477_v32  ;;  %527 = vmatpush2.msra.mxu0 %v412_v37  ;;  %v338_v1 = vadd.f32 %v326_v52, %v322_v43  ;;  %vm57_vm5 = vcmp.eq.s32.totalorder %v1105_v8, %v1007_v21  ;;  %v342_v9 = vadd.f32 %v334_v58, %v330_v54  ;;  %v792_v11 = vsel %vm130_vm12, 1.0, %v950_v33  ;;  %v405_v32 = vld [vmem:[#allocation6 + $0x1a8] sm:$0xff]  ;;  %v402_v42 = vld [vmem:[#allocation6 + $0x190] sm:$0xff] }
  0x42   :  { %598 = vmatpush2.msra.mxu1 %v476_v40  ;;  %528 = vmatprep.subr.mxu0 %v411_v46  ;;  %vm145_vm6 = vcmp.eq.s32.totalorder %v993_v10, %v1055_v47  ;;  %vm160_vm7 = vcmp.eq.s32.totalorder %v993_v10, %v1067_v53  ;;  %v172_v17 = vadd.f32 %v772_v59, %v767_v24  ;;  %v466_v43 = vld [vmem:[#allocation6 + $0x390] sm:$0xff]  ;;  %v401_v52 = vld [vmem:[#allocation6 + $0x188] sm:$0xff] }
  0x43   :  { %599 = vmatprep.subr.mxu1 %v475_v48  ;;  %529 = vmatpush2.msra.mxu0 %v410_v55  ;;  %v797_v16 = vsel %vm145_vm6, 1.0, %v950_v33  ;;  %v802_v15 = vsel %vm160_vm7, 1.0, %v950_v33  ;;  %v176_v18 = vadd.f32 %v782_v2, %v777_v60  ;;  %v1275_v26 = vadd.f32 %v1134_v22, %v1107_v12  ;;  %v404_v12 = vld [vmem:[#allocation6 + $0x1a0] sm:$0xff]  ;;  %v465_v54 = vld [vmem:[#allocation6 + $0x388] sm:$0xff] }
  0x44   :  { %600 = vmatpush2.msra.mxu1 %v474_v56  ;;  %530 = vmatprep.subr.mxu0 %v409_v62  ;;  %v1278_v28 = vadd.f32 %v340_v49, %v1225_v25  ;;  %v1281_v31 = vadd.f32 %v195_v34, %v1211_v6  ;;  %v1283_v37 = vadd.f32 %v342_v9, %v338_v1  ;;  %v468_v22 = vld [vmem:[#allocation6 + $0x3a0] sm:$0xff]  ;;  %v403_v34 = vld [vmem:[#allocation6 + $0x198] sm:$0xff]  ;;  %v397_v9 = vld [vmem:[#allocation6 + $0x168] sm:$0xff] }
  0x45   :  { %601 = vmatprep.subr.mxu1 %v473_v0  ;;  %531 = vmatpush2.msra.mxu0 %v408_v5  ;;  %vm202_vm9 = vcmp.eq.s32.totalorder %v993_v10, %v1080_v61  ;;  %vm217_vm10 = vcmp.eq.s32.totalorder %v993_v10, %v1136_v23  ;;  %v180_v25 = vadd.f32 %v792_v11, %v787_v4  ;;  %v400_v55 = vld [vmem:[#allocation6 + $0x180] sm:$0xff]  ;;  %v399_v62 = vld [vmem:[#allocation6 + $0x178] sm:$0xff]  ;;  %v398_v5 = vld [vmem:[#allocation6 + $0x170] sm:$0xff] }
  0x46   :  { %602 = vmatpush2.msra.mxu1 %v472_v7  ;;  %532 = vmatprep.subr.mxu0 %v407_v13  ;;  %v184_v40 = vadd.f32 %v802_v15, %v797_v16  ;;  %v1289_v6 = vadd.f32 %v176_v18, %v172_v17  ;;  %vm232_vm11 = vcmp.eq.s32.totalorder %v993_v10, %v1145_v29  ;;  %v807_v46 = vsel %vm202_vm9, 1.0, %v950_v33  ;;  %v464_v56 = vld [vmem:[#allocation6 + $0x380] sm:$0xff]  ;;  %v463_v0 = vld [vmem:[#allocation6 + $0x378] sm:$0xff]  ;;  %v462_v7 = vld [vmem:[#allocation6 + $0x370] sm:$0xff] }
  0x47   :  { %603 = vmatprep.subr.mxu1 %v471_v14  ;;  %533 = vmatpush2.msra.mxu0 %v406_v19  ;;  %vm247_vm12 = vcmp.eq.s32.totalorder %v993_v10, %v1159_v38  ;;  %vm262_vm13 = vcmp.eq.s32.totalorder %v993_v10, %v1169_v45  ;;  %v812_v48 = vsel %vm217_vm10, 1.0, %v950_v33  ;;  %v817_v49 = vsel %vm232_vm11, 1.0, %v950_v33  ;;  %v461_v11 = vld [vmem:[#allocation6 + $0x368] sm:$0xff]  ;;  %v396_v15 = vld [vmem:[#allocation6 + $0x160] sm:$0xff] }
  0x48   :  { %604 = vmatpush2.msra.mxu1 %v470_v20  ;;  %534 = vmatprep.subr.mxu0 %v405_v32  ;;  %v822_v50 = vsel %vm247_vm12, 1.0, %v950_v33  ;;  %vm277_vm14 = vcmp.eq.s32.totalorder %v993_v10, %v1185_v51  ;;  %vm292_vm15 = vcmp.eq.s32.totalorder %v993_v10, %v1195_v57  ;;  %vm307_vm0 = vcmp.eq.s32.totalorder %v993_v10, %v1204_v63 }
  0x49   :  { %605 = vmatprep.subr.mxu1 %v469_v35  ;;  %535 = vmatpush2.msra.mxu0 %v404_v12  ;;  %v827_v58 = vsel %vm262_vm13, 1.0, %v950_v33  ;;  %v832_v24 = vsel %vm277_vm14, 1.0, %v950_v33  ;;  %v837_v59 = vsel %vm292_vm15, 1.0, %v950_v33  ;;  %v842_v60 = vsel %vm307_vm0, 1.0, %v950_v33  ;;  %v458_v35 = vld [vmem:[#allocation6 + $0x350] sm:$0xff]  ;;  %v393_v12 = vld [vmem:[#allocation6 + $0x148] sm:$0xff] }
  0x4a   :  { %606 = vmatpush2.msra.mxu1 %v468_v22  ;;  %536 = vmatprep.subr.mxu0 %v403_v34  ;;  %v1320_v1 = vadd.f32 %v184_v40, %v180_v25  ;;  %v319_v2 = vadd.f32 %v812_v48, %v807_v46  ;;  %v323_v4 = vadd.f32 %v822_v50, %v817_v49  ;;  %v769_v10 = vsel %vm57_vm5, 1.0, %v950_v33  ;;  %v457_v22 = vld [vmem:[#allocation6 + $0x348] sm:$0xff]  ;;  %v455_v48 = vld [vmem:[#allocation6 + $0x338] sm:$0xff]  ;;  %v454_v50 = vld [vmem:[#allocation6 + $0x330] sm:$0xff] }
  0x4b   :  { %607 = vmatprep.subr.mxu1 %v467_v41  ;;  %537 = vmatpush2.msra.mxu0 %v402_v42  ;;  %vm72_vm2 = vcmp.eq.s32.totalorder %v1105_v8, %v1019_v27  ;;  %vm87_vm1 = vcmp.eq.s32.totalorder %v1105_v8, %v1024_v30  ;;  %vm102_vm3 = vcmp.eq.s32.totalorder %v1105_v8, %v1036_v36  ;;  %v460_v27 = vld [vmem:[#allocation6 + $0x360] sm:$0xff]  ;;  %v395_v30 = vld [vmem:[#allocation6 + $0x158] sm:$0xff]  ;;  %vm347_vm0 = vcmask 1040384  }
  0x4c   :  { %608 = vmatpush2.msra.mxu1 %v466_v43  ;;  %538 = vmatprep.subr.mxu0 %v401_v52  ;;  %v327_v13 = vadd.f32 %v832_v24, %v827_v58  ;;  %v331_v14 = vadd.f32 %v842_v60, %v837_v59  ;;  %v774_v16 = vsel %vm72_vm2, 1.0, %v950_v33  ;;  %v779_v21 = vsel %vm87_vm1, 1.0, %v950_v33  ;;  %v459_v36 = vld [vmem:[#allocation6 + $0x358] sm:$0xff]  ;;  %v392_v41 = vld [vmem:[#allocation6 + $0x140] sm:$0xff] }
  0x4d   :  { %609 = vmatprep.subr.mxu1 %v465_v54  ;;  %539 = vmatpush2.msra.mxu0 %v400_v55  ;;  %v784_v17 = vsel %vm102_vm3, 1.0, %v950_v33  ;;  %vm117_vm4 = vcmp.eq.s32.totalorder %v1105_v8, %v1041_v39  ;;  %vm132_vm8 = vcmp.eq.s32.totalorder %v1105_v8, %v1050_v44  ;;  %vm147_vm5 = vcmp.eq.s32.totalorder %v1105_v8, %v1055_v47  ;;  %v394_v39 = vld [vmem:[#allocation6 + $0x150] sm:$0xff]  ;;  %v456_v42 = vld [vmem:[#allocation6 + $0x340] sm:$0xff] }
  0x4e   :  { %610 = vmatpush2.msra.mxu1 %v464_v56  ;;  %540 = vmatprep.subr.mxu0 %v399_v62  ;;  %v1341_v18 = vadd.f32 %v323_v4, %v319_v2  ;;  %v789_v19 = vsel %vm117_vm4, 1.0, %v950_v33  ;;  %v794_v20 = vsel %vm132_vm8, 1.0, %v950_v33  ;;  %v799_v32 = vsel %vm147_vm5, 1.0, %v950_v33  ;;  %v453_v56 = vld [vmem:[#allocation6 + $0x328] sm:$0xff]  ;;  %v451_v62 = vld [vmem:[#allocation6 + $0x318] sm:$0xff] }
  0x4f   :  { %611 = vmatprep.subr.mxu1 %v463_v0  ;;  %541 = vmatpush2.msra.mxu0 %v398_v5  ;;  %vm162_vm6 = vcmp.eq.s32.totalorder %v1105_v8, %v1067_v53  ;;  %v174_v44 = vadd.f32 %v774_v16, %v769_v10  ;;  %v178_v47 = vadd.f32 %v784_v17, %v779_v21  ;;  %v391_v53 = vld [vmem:[#allocation6 + $0x138] sm:$0xff]  ;;  %v449_v10 = vld [vmem:[#allocation6 + $0x308] sm:$0xff]  ;;  %vm749_vm3 = vcmask 9216  }
  0x50   :  { %612 = vmatpush2.msra.mxu1 %v462_v7  ;;  %542 = vmatprep.subr.mxu0 %v397_v9  ;;  %v339_v25 = vadd.f32 %v331_v14, %v327_v13  ;;  %v804_v40 = vsel %vm162_vm6, 1.0, %v950_v33  ;;  %v182_v34 = vadd.f32 %v794_v20, %v789_v19  ;;  %vm204_vm7 = vcmp.eq.s32.totalorder %v1105_v8, %v1080_v61  ;;  %v390_v61 = vld [vmem:[#allocation6 + $0x130] sm:$0xff]  ;;  %v669_v17 = vld [vmem:[%s1493_s3 + $0xe8] sm:$0xff]  ;;  %v667_v19 = vld [vmem:[%s1493_s3 + $0xd8] sm:$0xff] }
  0x51   :  { %613 = vmatprep.subr.mxu1 %v461_v11  ;;  %543 = vmatpush2.msra.mxu0 %v396_v15  ;;  %v186_v43 = vadd.f32 %v804_v40, %v799_v32  ;;  %v190_v46 = vadd.f32 %v178_v47, %v174_v44  ;;  %vm219_vm9 = vcmp.eq.s32.totalorder %v1105_v8, %v1136_v23  ;;  %v809_v49 = vsel %vm204_vm7, 1.0, %v950_v33  ;;  %v384_v11 = vld [vmem:[#allocation6 + $0x100] sm:$0xff]  ;;  %v651_v20 = vld [vmem:[%s1493_s3 + $0x58] sm:$0xff]  ;;  %v666_v32 = vld [vmem:[%s1493_s3 + $0xd0] sm:$0xff] }
  0x52   :  { %614 = vmatpush2.msra.mxu1 %v460_v27  ;;  %544 = vmatprep.subr.mxu0 %v395_v30  ;;  %vm234_vm10 = vcmp.eq.s32.totalorder %v1105_v8, %v1145_v29  ;;  %vm249_vm11 = vcmp.eq.s32.totalorder %v1105_v8, %v1159_v38  ;;  %vm264_vm12 = vcmp.eq.s32.totalorder %v1105_v8, %v1169_v45  ;;  %v814_v23 = vsel %vm219_vm9, 1.0, %v950_v33  ;;  %v389_v29 = vld [vmem:[#allocation6 + $0x128] sm:$0xff]  ;;  %v388_v38 = vld [vmem:[#allocation6 + $0x120] sm:$0xff]  ;;  %v655_v27 = vld [vmem:[%s1493_s3 + $0x78] sm:$0xff] }
  0x53   :  { %615 = vmatprep.subr.mxu1 %v459_v36  ;;  %545 = vmatpush2.msra.mxu0 %v394_v39  ;;  %v819_v52 = vsel %vm234_vm10, 1.0, %v950_v33  ;;  %v824_v54 = vsel %vm249_vm11, 1.0, %v950_v33  ;;  %v829_v55 = vsel %vm264_vm12, 1.0, %v950_v33  ;;  %vm279_vm13 = vcmp.eq.s32.totalorder %v1105_v8, %v1185_v51  ;;  %v452_v45 = vld [vmem:[#allocation6 + $0x320] sm:$0xff]  ;;  %v387_v51 = vld [vmem:[#allocation6 + $0x118] sm:$0xff]  ;;  %v653_v30 = vld [vmem:[%s1493_s3 + $0x68] sm:$0xff] }
  0x54   :  { %616 = vmatpush2.msra.mxu1 %v458_v35  ;;  %546 = vmatprep.subr.mxu0 %v393_v12  ;;  %vm294_vm14 = vcmp.eq.s32.totalorder %v1105_v8, %v1195_v57  ;;  %vm309_vm15 = vcmp.eq.s32.totalorder %v1105_v8, %v1204_v63  ;;  %v194_v58 = vadd.f32 %v186_v43, %v182_v34  ;;  %v834_v24 = vsel %vm279_vm13, 1.0, %v950_v33  ;;  %v386_v8 = vld [vmem:[#allocation6 + $0x110] sm:$0xff]  ;;  %v668_v36 = vld [vmem:[%s1493_s3 + $0xe0] sm:$0xff]  ;;  %v665_v35 = vld [vmem:[%s1493_s3 + $0xc8] sm:$0xff] }
  0x55   :  { %617 = vmatprep.subr.mxu1 %v457_v22  ;;  %547 = vmatpush2.msra.mxu0 %v392_v41  ;;  %v839_v59 = vsel %vm294_vm14, 1.0, %v950_v33  ;;  %v844_v60 = vsel %vm309_vm15, 1.0, %v950_v33  ;;  %v321_v57 = vadd.f32 %v814_v23, %v809_v49  ;;  %v325_v0 = vadd.f32 %v824_v54, %v819_v52  ;;  %v450_v63 = vld [vmem:[#allocation6 + $0x310] sm:$0xff]  ;;  %v385_v33 = vld [vmem:[#allocation6 + $0x108] sm:$0xff]  ;;  %v664_v47 = vld [vmem:[%s1493_s3 + $0xc0] sm:$0xff] }
  0x56   :  { %618 = vmatpush2.msra.mxu1 %v456_v42  ;;  %548 = vmatprep.subr.mxu0 %v391_v53  ;;  %v329_v2 = vadd.f32 %v834_v24, %v829_v55  ;;  %v196_v4 = vadd.f32 %v1320_v1, %v1289_v6  ;;  %v343_v5 = vadd.f32 %v339_v25, %v1341_v18  ;;  %v448_v6 = vld [vmem:[#allocation6 + $0x300] sm:$0xff]  ;;  %v650_v39 = vld [vmem:[%s1493_s3 + $0x50] sm:$0xff]  ;;  %v649_v44 = vld [vmem:[%s1493_s3 + $0x48] sm:$0xff]  ;;  %v483_v55 = vshrl.u32 %v48_v3, 7 }
  0x57   :  { %619 = vmatprep.subr.mxu1 %v455_v48  ;;  %549 = vmatpush2.msra.mxu0 %v390_v61  ;;  %v333_v7 = vadd.f32 %v844_v60, %v839_v59  ;;  %v337_v9 = vadd.f32 %v325_v0, %v321_v57  ;;  %v349_v13 = vsel %vm347_vm0, %v1275_v26, %v1278_v28  ;;  %v671_v26 = vld [vmem:[%s1493_s3 + $0xf8] sm:$0xff]  ;;  %v652_v18 = vld [vmem:[%s1493_s3 + $0x60] sm:$0xff]  ;;  %v662_v40 = vld [vmem:[%s1493_s3 + $0xb0] sm:$0xff] }
  0x58   :  { %620 = vmatpush2.msra.mxu1 %v454_v50  ;;  %550 = vmatprep.subr.mxu0 %v389_v29  ;;  %v198_v14 = vadd.f32 %v194_v58, %v190_v46  ;;  %v351_v1 = vsel %vm347_vm0, %v1281_v31, %v1283_v37  ;;  %v348_v21 = vsel %vm347_vm0, %v196_v4, %v343_v5  ;;  %v670_v31 = vld [vmem:[%s1493_s3 + $0xf0] sm:$0xff]  ;;  %v648_v12 = vld [vmem:[%s1493_s3 + $0x40] sm:$0xff]  ;;  %v663_v22 = vld [vmem:[%s1493_s3 + $0xb8] sm:$0xff]  ;;  %v484_v29 = vsub.s32 0, %v483_v55 }
  0x59   :  { %621 = vmatprep.subr.mxu1 %v453_v56  ;;  %551 = vmatpush2.msra.mxu0 %v388_v38  ;;  %v341_v16 = vadd.f32 %v333_v7, %v329_v2  ;;  %v654_v37 = vld [vmem:[%s1493_s3 + $0x70] sm:$0xff]  ;;  %v647_v25 = vld [vmem:[%s1493_s3 + $0x38] sm:$0xff]  ;;  %v661_v41 = vld [vmem:[%s1493_s3 + $0xa8] sm:$0xff]  ;;  %v488_v38 = vsub.s32 1, %v483_v55 }
  0x5a   :  { %622 = vmatpush2.msra.mxu1 %v452_v45  ;;  %552 = vmatprep.subr.mxu0 %v387_v51  ;;  %v646_v34 = vld [vmem:[%s1493_s3 + $0x30] sm:$0xff]  ;;  %v645_v42 = vld [vmem:[%s1493_s3 + $0x28] sm:$0xff]  ;;  %v660_v43 = vld [vmem:[%s1493_s3 + $0xa0] sm:$0xff] }
  0x5b   :  { %623 = vmatprep.subr.mxu1 %v451_v62  ;;  %553 = vmatpush2.msra.mxu0 %v386_v8  ;;  %v345_v15 = vadd.f32 %v341_v16, %v337_v9  ;;  %v644_v46 = vld [vmem:[%s1493_s3 + $0x20] sm:$0xff]  ;;  %v659_v53 = vld [vmem:[%s1493_s3 + $0x98] sm:$0xff]  ;;  %v658_v49 = vld [vmem:[%s1493_s3 + $0x90] sm:$0xff] }
  0x5c   :  { %624 = vmatpush2.msra.mxu1 %v450_v63  ;;  %554 = vmatprep.subr.mxu0 %v385_v33  ;;  %v643_v48 = vld [vmem:[%s1493_s3 + $0x18] sm:$0xff]  ;;  %v642_v61 = vld [vmem:[%s1493_s3 + $0x10] sm:$0xff]  ;;  %v657_v50 = vld [vmem:[%s1493_s3 + $0x88] sm:$0xff] }
  0x5d   :  { %625 = vmatprep.subr.mxu1 %v449_v10  ;;  %555 = vmatpush2.msra.mxu0 %v384_v11  ;;  %v350_v28 = vsel %vm347_vm0, %v198_v14, %v345_v15  ;;  %v641_v23 = vld [vmem:[%s1493_s3 + $0x8] sm:$0xff]  ;;  %v656_v52 = vld [vmem:[%s1493_s3 + $0x80] sm:$0xff] }
  0x5e   :  { %556 = vmatprep.mubr.f32.mxu0 %v349_v13  ;;  %626 = vmatpush2.msra.mxu1 %v448_v6  ;;  %v640_v54 = vld [vmem:[%s1493_s3] sm:$0xff] }
  0x5f   :  { %627 = vmatprep.mubr.f32.mxu1 %v351_v1  ;;  %557 = vmatmul.mubr.f32.vlgmr.msra.gmra.mxu0 %v348_v21  ;;  %v480_v56 = vld [vmem:[%s1492_s2] sm:$0x3] }
  0x60   :  { %628 = vmatmul.mubr.f32.vlgmr.msra.gmra.mxu1 %v350_v28  ;;  %847 = vmatprep.subr.mxu0 %v671_v26  ;;  %v485_v45 = vrot.slane %v480_v56, %v484_v29  ;;  %v489_v58 = vrot.slane %v480_v56, %v488_v38  ;;  %v846_v33 = vld [vmem:[%s1494_s4] ss:$0 sm:$0xff] }
  0x61   :  { %848 = vmatpush3.msra.mxu0 %v655_v27 }
  0x62   :  { %849 = vmatprep.subr.mxu0 %v670_v31 }
  0x63   :  { %850 = vmatpush3.msra.mxu0 %v654_v37 }
  0x64   :  { %851 = vmatprep.subr.mxu0 %v669_v17 }
  0x65   :  { %852 = vmatpush3.msra.mxu0 %v653_v30 }
  0x66   :  { %853 = vmatprep.subr.mxu0 %v668_v36 }
  0x67   :  { %854 = vmatpush3.msra.mxu0 %v652_v18 }
  0x68   :  { %855 = vmatprep.subr.mxu0 %v667_v19 }
  0x69   :  { %856 = vmatpush3.msra.mxu0 %v651_v20 }
  0x6a   :  { %857 = vmatprep.subr.mxu0 %v666_v32 }
  0x6b   :  { %858 = vmatpush3.msra.mxu0 %v650_v39 }
  0x6c   :  { %859 = vmatprep.subr.mxu0 %v665_v35 }
  0x6d   :  { %860 = vmatpush3.msra.mxu0 %v649_v44 }
  0x6e   :  { %861 = vmatprep.subr.mxu0 %v664_v47 }
  0x6f   :  { %862 = vmatpush3.msra.mxu0 %v648_v12 }
  0x70   :  { %863 = vmatprep.subr.mxu0 %v663_v22 }
  0x71   :  { %864 = vmatpush3.msra.mxu0 %v647_v25 }
  0x72   :  { %865 = vmatprep.subr.mxu0 %v662_v40 }
  0x73   :  { %866 = vmatpush3.msra.mxu0 %v646_v34 }
  0x74   :  { %867 = vmatprep.subr.mxu0 %v661_v41 }
  0x75   :  { %868 = vmatpush3.msra.mxu0 %v645_v42 }
  0x76   :  { %869 = vmatprep.subr.mxu0 %v660_v43 }
  0x77   :  { %870 = vmatpush3.msra.mxu0 %v644_v46 }
  0x78   :  { %871 = vmatprep.subr.mxu0 %v659_v53 }
  0x79   :  { %872 = vmatpush3.msra.mxu0 %v643_v48 }
  0x7a   :  { %873 = vmatprep.subr.mxu0 %v658_v49 }
  0x7b   :  { %874 = vmatpush3.msra.mxu0 %v642_v61 }
  0x7c   :  { %875 = vmatprep.subr.mxu0 %v657_v50 }
  0x7d   :  { %876 = vmatpush3.msra.mxu0 %v641_v23 }
  0x7e   :  { %877 = vmatprep.subr.mxu0 %v656_v52 }
  0x7f   :  { %878 = vmatpush3.msra.mxu0 %v640_v54 }
 0x11f   :  { %v558_v24 = vpop.f32.mrf.mxu0 }
 0x120   :  { %v629_v59 = vpop.f32.mrf.mxu1  ;;  %v559_v60 = vadd.f32 %v558_v24, %v485_v45 }
 0x121   :  { %v560_v51 = vpop.f32.mrf.mxu0 }
 0x122   :  { %v630_v62 = vadd.f32 %v629_v59, %v559_v60  ;;  %v561_v57 = vadd.f32 %v560_v51, %v489_v58  ;;  %v631_v0 = vpop.f32.mrf.mxu1 }
 0x124   :  { %v632_v2 = vadd.f32 %v631_v0, %v561_v57  ;;  %v636_v8 = vmul.f32 0.01, %v630_v62  ;;  %vm634_vm2 = vcmp.gt.f32.partialorder %v630_v62, 0.0 }
 0x126   :  { %v637_v63 = vmul.f32 0.01, %v632_v2  ;;  %vm635_vm1 = vcmp.gt.f32.partialorder %v632_v2, 0.0  ;;  %v638_v4 = vsel %vm634_vm2, %v630_v62, %v636_v8 }
 0x128   :  { %v639_v3 = vsel %vm635_vm1, %v632_v2, %v637_v63 }
 0x129   :  { %743 = vmatprep.mubr.f32.mxu0 %v639_v3 }
 0x12a   :  { %744 = vmatmul.mubr.f32.vlgmr.msra.gmra.mxu0 %v638_v4 }
 0x1ea   :  { %v879_v5 = vpop.f32.mrf.mxu0 }
 0x1ec   :  { %v880_v7 = vpop.f32.mrf.mxu0 }
 0x1ed   :  { %v881_v10 = vadd.f32 %v880_v7, %v879_v5 }
 0x1ef   :  { %v746_v9 = vadd.f32 %v881_v10, %v846_v33 }
 0x1f1   :  { %750 = vst.msk [vmem:[#allocation7] sm:$0x3] %vm749_vm3, %v746_v9 }
 0x1f2   :  { %931 = shalt.err (!%p928_p0)
}
 0x1f3   :  { %760 = dma.vmem_to_hbm [thread:$0]  %s758_s19, 32, %s1495_s5, [#allocation4]  }
 0x1f4   :  { %944 = dma.done.wait [#allocation4], 32  }
 0x1f5   :  { %945 = vsyncadd [#allocation4], 4294967264 }
 0x1f6   :  { %764 = vsyncpa [#allocation3], 1 }
 0x1f7   :  { %765 = vsyncpa [#allocation4], 1 }
 0x1f8   :  { %766 = vsyncpa [#allocation5], 1 }

</bundles_post_ra>
